<compile_context>
chip_gen: v5e
topology: v5e:2x2
jax: 0.10.0
libtpu: 0.0.40
codegen_flags: <defaults>
</compile_context>

<pallas_src>
import functools
import math

import jax
import jax.numpy as jnp
from jax.experimental import pallas as pl
from jax.experimental.pallas import tpu as pltpu


_LANE = 128
_MIB = 1024 * 1024


def _pad_to(x, m):
    return ((x + m - 1) // m) * m


def _tpu_vmem_capacity_bytes():
    try:
        info = pltpu.get_tpu_info()
        cap = getattr(info, "vmem_capacity_bytes", None)
        if cap:
            return int(cap)
    except Exception:
        pass
    return 128 * _MIB


# --------------------------------------------------------------------------- #
# Kernel 1: per-layer precompute (hoisted grid-invariant work)                 #
# --------------------------------------------------------------------------- #
def _gat_precompute_kernel(h_ref, w_ext_ref, w_src_ref, z_ref, ssrc_ref,
                           sdst_ref, *, real_width, num_heads, apply_elu,
                           mxu_dtype):
    x = h_ref[...]                                          # (tile_src, in_dim_p) f32
    if apply_elu:                                           # fused inter-layer F.elu
        x = jnp.where(x > 0, x, jnp.exp(x) - 1.0)
    xm = x.astype(mxu_dtype)

    # One wide MXU pass: all heads' z AND the dst attention scores
    # (a_dst columns packed into the 128-lane pad of the fc output).
    z_ext = jnp.dot(xm, w_ext_ref[...].astype(mxu_dtype),
                    preferred_element_type=jnp.float32)     # (tile_src, z_width)
    z_ref[...] = z_ext.astype(z_ref.dtype)
    sdst_ref[...] = z_ext[:, real_width:real_width + num_heads]  # (tile_src, NH) f32

    # src scores directly in (NH, n_src) lane orientation (no XLU relayout).
    ssrc_ref[...] = jnp.einsum('hd,nd->hn',
                               w_src_ref[...].astype(mxu_dtype), xm,
                               preferred_element_type=jnp.float32)


# --------------------------------------------------------------------------- #
# Kernel 2: per-dst-tile masked softmax + aggregation                          #
# --------------------------------------------------------------------------- #
def _gat_attend_kernel(z_ref, ssrc_ref, sdst_ref, adj_ref, out_ref, *,
                       num_heads, head_dim, out_final, tile_dst, use_residual,
                       negative_slope, mxu_dtype):
    adj = adj_ref[...]                                      # (tile_dst, n_src_p) int8
    active = adj != 0
    # single select per tile; masked entries get a huge negative additive bias
    bias = jnp.where(active, 0.0, -1e30)                    # f32
    # rows with zero in-degree (padding dst rows / isolated nodes) -> zero output
    row_ok = (jnp.max(bias, axis=-1, keepdims=True) == 0.0).astype(jnp.float32)

    s_src_t = ssrc_ref[...]                                 # (NH, n_src_p) f32
    s_dst = sdst_ref[...]                                   # (tile_dst, NH) f32

    if use_residual:
        start = pl.multiple_of(pl.program_id(0) * tile_dst, tile_dst)
        z_dst_tile = z_ref[pl.ds(start, tile_dst), :].astype(jnp.float32)

    pieces = []
    for hd in range(num_heads):
        # e[v, u] = leaky_relu(a_src . z_u + a_dst . z_v) on existing edges
        e = s_dst[:, hd:hd + 1] + s_src_t[hd:hd + 1, :]     # (tile_dst, n_src_p)
        e = jnp.maximum(e, negative_slope * e)              # leaky_relu (2 VPU ops)
        e = e + bias
        m = jnp.max(e, axis=-1, keepdims=True)
        p = jnp.exp(e - m)                                  # masked -> exp underflow -> 0
        denom = jnp.sum(p, axis=-1, keepdims=True)          # >= 1 for rows with edges
        inv = pl.reciprocal(denom, approx=True)             # EUP
        inv = inv * (2.0 - denom * inv)                     # one Newton step
        alpha = p * (inv * row_ok)                          # (tile_dst, n_src_p)

        zh = z_ref[:, hd * head_dim:(hd + 1) * head_dim]    # (n_src_p, head_dim)
        oh = jnp.dot(alpha.astype(mxu_dtype), zh.astype(mxu_dtype),
                     preferred_element_type=jnp.float32)    # (tile_dst, head_dim)
        if use_residual:
            oh = oh + z_dst_tile[:, hd * head_dim:(hd + 1) * head_dim]
        pieces.append(oh)

    pad_cols = out_final - num_heads * head_dim
    if pad_cols:
        pieces.append(jnp.zeros((tile_dst, pad_cols), jnp.float32))
    # single lane-dense (tile_dst, 128k) store
    out_ref[...] = jnp.concatenate(pieces, axis=-1).astype(out_ref.dtype)


# --------------------------------------------------------------------------- #
# One MultiHeadGATLayer (all heads fused) = precompute call + attend call      #
# --------------------------------------------------------------------------- #
def gat_layer_fused(h, fc_ws, attn_ws, adj, n_dst, *, apply_elu, use_residual,
                    mxu_dtype=jnp.bfloat16):
    """All heads of one MultiHeadGATLayer.

    h:       (n_rows, in_dim) node features; rows beyond adj.shape[1] must be
             zero padding (they are masked by the zero-padded adjacency).
    fc_ws:   list of per-head (head_dim, in_dim) torch nn.Linear weights.
    attn_ws: list of per-head (1, 2*head_dim) attn_fc weights.
    adj:     (n_dst, n_src) {0,1} adjacency, adj[v, u] = 1 iff edge u -> v.

    Returns (out_padded, real_width): out_padded is (n_dst_p, out_final) with
    the real result in [:n_dst, :real_width]; padding rows/cols are exactly
    zero so it can feed the next layer without an HBM round-trip.
    """
    num_heads = len(fc_ws)
    head_dim = fc_ws[0].shape[0]
    in_dim = h.shape[1]
    n_rows = h.shape[0]
    real_width = num_heads * head_dim

    in_dim_p = _pad_to(in_dim, _LANE)
    out_final = _pad_to(real_width, _LANE)                    # lane-dense output slab
    z_width = _pad_to(real_width + num_heads, _LANE)          # fc + packed dst scores

    # ---- generation-aware budgets ------------------------------------------
    vmem_cap = _tpu_vmem_capacity_bytes()
    vmem_limit = int(min(vmem_cap * 7 // 8, 100 * _MIB))      # ~100 MiB v5e/v6e, ~56 MiB v7x
    max_tile_dst = 512 if vmem_cap >= 96 * _MIB else 256
    # shrink dst tile if the (tile x n_src) f32 softmax temporaries crowd VMEM
    n_src_guess = _pad_to(max(n_rows, n_dst), _LANE)
    cap = max(128, ((vmem_limit // 3) // (16 * n_src_guess)) // 128 * 128)
    max_tile_dst = min(max_tile_dst, cap)

    if n_dst <= max_tile_dst:
        tile_dst = _pad_to(n_dst, 32)                         # int8 sublane granularity
    else:
        tile_dst = max(128, (max_tile_dst // 128) * 128)
    n_dst_p = _pad_to(n_dst, tile_dst)
    n_src_p = max(_pad_to(max(n_rows, n_dst, adj.shape[1]), _LANE), n_dst_p)
    tile_src = 512 if n_src_p % 512 == 0 else (256 if n_src_p % 256 == 0 else 128)

    # ---- pad inputs (zero padding keeps results exact) ----------------------
    h_p = jnp.pad(h.astype(jnp.float32),
                  ((0, n_src_p - n_rows), (0, in_dim_p - in_dim)))
    adj_i8 = (adj != 0).astype(jnp.int8)
    adj_p = jnp.pad(adj_i8, ((0, n_dst_p - adj_i8.shape[0]),
                             (0, n_src_p - adj_i8.shape[1])))

    # ---- fold fc weights of all heads + a_dst columns into one matrix -------
    w_z = jnp.concatenate([w.T for w in fc_ws], axis=1)              # (in, NH*hd)
    w_dst = jnp.stack([fc_ws[i].T @ attn_ws[i][0, head_dim:]
                       for i in range(num_heads)], axis=1)           # (in, NH)
    w_ext = jnp.zeros((in_dim_p, z_width), jnp.float32)
    w_ext = w_ext.at[:in_dim, :real_width].set(w_z)
    w_ext = w_ext.at[:in_dim, real_width:real_width + num_heads].set(w_dst)
    # a_src folded the other way: (NH, in_dim_p) operand whose MXU product with
    # h yields src scores directly in (NH, n_src) lane layout.
    w_src_t = jnp.stack([fc_ws[i].T @ attn_ws[i][0, :head_dim]
                         for i in range(num_heads)], axis=0)         # (NH, in)
    w_src_t = jnp.pad(w_src_t, ((0, 0), (0, in_dim_p - in_dim))).astype(jnp.float32)

    z_dtype = jnp.dtype(mxu_dtype)                                   # bf16 by default

    # ---- call 1: hoisted precompute over src tiles ---------------------------
    pre_kernel = functools.partial(
        _gat_precompute_kernel, real_width=real_width, num_heads=num_heads,
        apply_elu=apply_elu, mxu_dtype=mxu_dtype)
    z_full, s_src_t, s_dst_full = pl.pallas_call(
        pre_kernel,
        out_shape=(jax.ShapeDtypeStruct((n_src_p, z_width), z_dtype),
                   jax.ShapeDtypeStruct((num_heads, n_src_p), jnp.float32),
                   jax.ShapeDtypeStruct((n_src_p, num_heads), jnp.float32)),
        grid=(n_src_p // tile_src,),
        in_specs=[pl.BlockSpec((tile_src, in_dim_p), lambda i: (i, 0)),
                  pl.BlockSpec((in_dim_p, z_width), lambda i: (0, 0)),
                  pl.BlockSpec((num_heads, in_dim_p), lambda i: (0, 0))],
        out_specs=(pl.BlockSpec((tile_src, z_width), lambda i: (i, 0)),
                   pl.BlockSpec((num_heads, tile_src), lambda i: (0, i)),
                   pl.BlockSpec((tile_src, num_heads), lambda i: (i, 0))),
        compiler_params=pltpu.CompilerParams(
            dimension_semantics=("parallel",), vmem_limit_bytes=vmem_limit),
    )(h_p, w_ext, w_src_t)

    # ---- call 2: per-dst-tile masked softmax + aggregation -------------------
    n_tiles = n_dst_p // tile_dst
    attend_kernel = functools.partial(
        _gat_attend_kernel, num_heads=num_heads, head_dim=head_dim,
        out_final=out_final, tile_dst=tile_dst, use_residual=use_residual,
        negative_slope=0.01, mxu_dtype=mxu_dtype)

    cost = pl.CostEstimate(
        flops=int(2 * n_dst_p * n_src_p * real_width
                  + 6 * num_heads * n_dst_p * n_src_p),
        transcendentals=int(num_heads * n_dst_p * n_src_p),
        bytes_accessed=int(n_dst_p * n_src_p                     # adj (int8)
                           + n_src_p * z_width * z_dtype.itemsize
                           + n_dst_p * out_final * 4
                           + n_src_p * num_heads * 8))

    def _attend(single_buffer_resident):
        resident = ({"pipeline_mode": pl.Buffered(1)}
                    if single_buffer_resident else {})
        in_specs = [
            pl.BlockSpec((n_src_p, z_width), lambda i: (0, 0), **resident),
            pl.BlockSpec((num_heads, n_src_p), lambda i: (0, 0), **resident),
            pl.BlockSpec((tile_dst, num_heads), lambda i: (i, 0)),
            pl.BlockSpec((tile_dst, n_src_p), lambda i: (i, 0)),
        ]
        return pl.pallas_call(
            attend_kernel,
            out_shape=jax.ShapeDtypeStruct((n_dst_p, out_final), jnp.float32),
            grid=(n_tiles,),
            in_specs=in_specs,
            out_specs=pl.BlockSpec((tile_dst, out_final), lambda i: (i, 0)),
            compiler_params=pltpu.CompilerParams(
                dimension_semantics=("parallel",), vmem_limit_bytes=vmem_limit),
            cost_estimate=cost,
        )(z_full, s_src_t, s_dst_full, adj_p)

    try:
        out_padded = _attend(True)       # resident z / s_src single-buffered
    except Exception:
        out_padded = _attend(False)      # fallback: default double buffering

    return out_padded, real_width


def gat_forward(params, features, adjs, n_dsts, *, use_residual=False,
                mxu_dtype=jnp.bfloat16):
    """GAT.forward: layer1 (multi-head, concat) -> elu -> layer2 (1 head).

    mxu_dtype=bfloat16 (default) uses bf16 MXU operands with f32 accumulation
    and f32 softmax math; pass jnp.float32 for exact torch-f32 semantics.
    """
    fc1 = [fw for (fw, _) in params['layer1']]
    at1 = [aw for (_, aw) in params['layer1']]
    h1_pad, _ = gat_layer_fused(
        features, fc1, at1, adjs[0], n_dsts[0],
        apply_elu=False, use_residual=use_residual, mxu_dtype=mxu_dtype)

    # h1_pad has exact zeros in padding rows/cols, so it feeds layer 2 directly
    # (whose fc weight is zero-padded on the input dim): no HBM re-pack.
    fw2, aw2 = params['layer2'][0]
    fw2_p = jnp.pad(fw2, ((0, 0), (0, h1_pad.shape[1] - fw2.shape[1])))
    h2_pad, h2_width = gat_layer_fused(
        h1_pad, [fw2_p], [aw2], adjs[1], n_dsts[1],
        apply_elu=True, use_residual=use_residual, mxu_dtype=mxu_dtype)
    return h2_pad[:n_dsts[1], :h2_width]


# ----------------- deterministic parameter init (xavier_normal, gain=relu) ---
def _xavier_normal(key, shape, gain):
    fan_out, fan_in = shape
    std = gain * math.sqrt(2.0 / (fan_in + fan_out))
    return jax.random.normal(key, shape, jnp.float32) * std


def init_gat_params(key, in_dim, hidden_dim, out_dim, num_heads):
    gain = math.sqrt(2.0)  # nn.init.calculate_gain('relu')
    keys = jax.random.split(key, 2 * num_heads + 2)
    layer1 = []
    for i in range(num_heads):
        fc_w = _xavier_normal(keys[2 * i], (hidden_dim, in_dim), gain)
        attn_w = _xavier_normal(keys[2 * i + 1], (1, 2 * hidden_dim), gain)
        layer1.append((fc_w, attn_w))
    fc_w2 = _xavier_normal(keys[-2], (out_dim, hidden_dim * num_heads), gain)
    attn_w2 = _xavier_normal(keys[-1], (1, 2 * out_dim), gain)
    return {'layer1': layer1, 'layer2': [(fc_w2, attn_w2)]}


# ----------------- pure-JAX reference (mirrors torch/DGL semantics) ----------
def _ref_layer(h, fc_w, attn_w, adj, n_dst, *, apply_elu, use_residual):
    if apply_elu:
        h = jnp.where(h > 0, h, jnp.exp(h) - 1.0)
    z = h @ fc_w.T
    out_dim = fc_w.shape[0]
    z_dst = z[:n_dst]
    s_src = z @ attn_w[0, :out_dim]
    s_dst = z_dst @ attn_w[0, out_dim:]
    e = s_dst[:, None] + s_src[None, :]
    e = jnp.where(e > 0, e, 0.01 * e)
    mask = adj > 0.5
    e = jnp.where(mask, e, -1e30)
    p = jnp.exp(e - e.max(-1, keepdims=True))
    p = jnp.where(mask, p, 0.0)
    alpha = p / p.sum(-1, keepdims=True)
    out = alpha @ z
    if use_residual:
        out = out + z_dst
    return out


def _ref_forward(params, features, adjs, n_dsts, *, use_residual=False):
    heads = [_ref_layer(features, fw, aw, adjs[0], n_dsts[0],
                        apply_elu=False, use_residual=use_residual)
             for (fw, aw) in params['layer1']]
    h = jnp.concatenate(heads, axis=1)
    fw2, aw2 = params['layer2'][0]
    return _ref_layer(h, fw2, aw2, adjs[1], n_dsts[1],
                      apply_elu=True, use_residual=use_residual)


if __name__ == "__main__":
    key = jax.random.PRNGKey(0)
    k_param, k_feat, k_adj0, k_adj1 = jax.random.split(key, 4)

    in_dim, hidden_dim, out_dim, num_heads = 16, 8, 8, 2
    n_src0, n_dst0 = 16, 8      # block 0
    n_src1, n_dst1 = n_dst0, 8  # block 1 (src nodes = dst nodes of block 0)

    params = init_gat_params(k_param, in_dim, hidden_dim, out_dim, num_heads)
    features = jax.random.normal(k_feat, (n_src0, in_dim), jnp.float32)

    # Dense block adjacencies; self-edge on each dst node so every real mailbox
    # is non-empty (empty mailboxes get zeros, unlike DGL's undefined result).
    adj0 = jnp.maximum(
        jax.random.bernoulli(k_adj0, 0.4, (n_dst0, n_src0)).astype(jnp.float32),
        jnp.eye(n_dst0, n_src0, dtype=jnp.float32))
    adj1 = jnp.maximum(
        jax.random.bernoulli(k_adj1, 0.4, (n_dst1, n_src1)).astype(jnp.float32),
        jnp.eye(n_dst1, n_src1, dtype=jnp.float32))

    ref = _ref_forward(params, features, (adj0, adj1), (n_dst0, n_dst1),
                       use_residual=False)

    # exactness check with f32 MXU operands
    out_f32 = gat_forward(params, features, (adj0, adj1), (n_dst0, n_dst1),
                          use_residual=False, mxu_dtype=jnp.float32)
    out_f32 = jax.block_until_ready(out_f32)
    assert out_f32.shape == (n_dst1, out_dim)
    assert jnp.allclose(out_f32, ref, atol=1e-3, rtol=1e-3), \
        "f32 kernel mismatch vs reference"

    # default fast path (bf16 MXU operands, f32 accumulation / softmax)
    out_bf16 = gat_forward(params, features, (adj0, adj1), (n_dst0, n_dst1),
                           use_residual=False)
    out_bf16 = jax.block_until_ready(out_bf16)
    assert out_bf16.shape == (n_dst1, out_dim)
    assert jnp.allclose(out_bf16, ref, atol=1e-1, rtol=1e-1), \
        "bf16 kernel diverged from reference"

    print("KERNEL_OK")
</pallas_src>

<mosaic_0001>
module attributes {stable_mosaic.version = 11 : i64} {
  func.func @_gat_precompute_kernel(%arg0: i32, %arg1: memref<128x128xf32, #tpu.memory_space<vmem>>, %arg2: memref<128x128xf32, #tpu.memory_space<vmem>>, %arg3: memref<2x128xf32, #tpu.memory_space<vmem>>, %arg4: memref<128x128xf32, #tpu.memory_space<vmem>>, %arg5: memref<2x128xf32, #tpu.memory_space<vmem>>, %arg6: memref<128x2xf32, #tpu.memory_space<vmem>>) attributes {dimension_semantics = [#tpu.dimension_semantics<parallel>], iteration_bounds = array<i64: 1>, scalar_prefetch = 0 : i64, scratch_operands = 0 : i64, tpu.core_type = #tpu.core_type<tc>, window_params = [{transform_indices = @transform_0, window_bounds = array<i64: 128, 128>}, {pipeline_mode = #tpu.pipeline_mode<synchronous>, transform_indices = @transform_1, window_bounds = array<i64: 128, 128>}, {pipeline_mode = #tpu.pipeline_mode<synchronous>, transform_indices = @transform_2, window_bounds = array<i64: 2, 128>}, {transform_indices = @transform_3, window_bounds = array<i64: 128, 128>}, {transform_indices = @transform_4, window_bounds = array<i64: 2, 128>}, {transform_indices = @transform_5, window_bounds = array<i64: 128, 2>}]} {
    %c0 = arith.constant 0 : index
    %c0_0 = arith.constant 0 : index
    %0 = vector.load %arg1[%c0, %c0_0] : memref<128x128xf32, #tpu.memory_space<vmem>>, vector<128x128xf32>
    %c0_1 = arith.constant 0 : index
    %c0_2 = arith.constant 0 : index
    %1 = vector.load %arg2[%c0_1, %c0_2] : memref<128x128xf32, #tpu.memory_space<vmem>>, vector<128x128xf32>
    %cst = arith.constant dense<0.000000e+00> : vector<128x128xf32>
    %2 = tpu.matmul %0, %1, %cst {dimension_numbers = #tpu.dot_dimension_numbers<[1], [0], [0], [1], [0, 0, 1, 1], [], []>} : vector<128x128xf32>, vector<128x128xf32>, vector<128x128xf32> -> vector<128x128xf32>
    %c0_3 = arith.constant 0 : index
    %c0_4 = arith.constant 0 : index
    %3 = vector.load %arg4[%c0_3, %c0_4] : memref<128x128xf32, #tpu.memory_space<vmem>>, vector<128x128xf32>
    tpu.vector_store %arg4[%c0_3, %c0_4], %2 {strides = array<i32>} : memref<128x128xf32, #tpu.memory_space<vmem>>, vector<128x128xf32>,
    %4 = vector.extract_strided_slice %2 {offsets = [0, 16], sizes = [128, 2], strides = [1, 1]} : vector<128x128xf32> to vector<128x2xf32>
    %c0_5 = arith.constant 0 : index
    %c0_6 = arith.constant 0 : index
    %5 = vector.load %arg6[%c0_5, %c0_6] : memref<128x2xf32, #tpu.memory_space<vmem>>, vector<128x2xf32>
    tpu.vector_store %arg6[%c0_5, %c0_6], %4 {strides = array<i32>} : memref<128x2xf32, #tpu.memory_space<vmem>>, vector<128x2xf32>,
    %c0_7 = arith.constant 0 : index
    %c0_8 = arith.constant 0 : index
    %6 = vector.load %arg3[%c0_7, %c0_8] : memref<2x128xf32, #tpu.memory_space<vmem>>, vector<2x128xf32>
    "tpu.trace_start"() <{level = 10 : i32, message = "hd,nd->hn"}> : () -> ()
    %cst_9 = arith.constant dense<0.000000e+00> : vector<2x128xf32>
    %7 = tpu.matmul %6, %0, %cst_9 {dimension_numbers = #tpu.dot_dimension_numbers<[1], [1], [0], [0], [0, 0, 1, 0], [], []>} : vector<2x128xf32>, vector<128x128xf32>, vector<2x128xf32> -> vector<2x128xf32>
    "tpu.trace_stop"() : () -> ()
    %c0_10 = arith.constant 0 : index
    %c0_11 = arith.constant 0 : index
    %8 = vector.load %arg5[%c0_10, %c0_11] : memref<2x128xf32, #tpu.memory_space<vmem>>, vector<2x128xf32>
    tpu.vector_store %arg5[%c0_10, %c0_11], %7 {strides = array<i32>} : memref<2x128xf32, #tpu.memory_space<vmem>>, vector<2x128xf32>,
    return
  }
  func.func @transform_0(%arg0: i32) -> (i32, i32) {
    %c0_i32 = arith.constant 0 : i32
    %c0_i32_0 = arith.constant 0 : i32
    return %arg0, %c0_i32 : i32, i32
  }
  func.func @transform_1(%arg0: i32) -> (i32, i32) {
    %c0_i32 = arith.constant 0 : i32
    %c0_i32_0 = arith.constant 0 : i32
    %c0_i32_1 = arith.constant 0 : i32
    return %c0_i32, %c0_i32_0 : i32, i32
  }
  func.func @transform_2(%arg0: i32) -> (i32, i32) {
    %c0_i32 = arith.constant 0 : i32
    %c0_i32_0 = arith.constant 0 : i32
    %c0_i32_1 = arith.constant 0 : i32
    return %c0_i32, %c0_i32_0 : i32, i32
  }
  func.func @transform_3(%arg0: i32) -> (i32, i32) {
    %c0_i32 = arith.constant 0 : i32
    %c0_i32_0 = arith.constant 0 : i32
    return %arg0, %c0_i32 : i32, i32
  }
  func.func @transform_4(%arg0: i32) -> (i32, i32) {
    %c0_i32 = arith.constant 0 : i32
    %c0_i32_0 = arith.constant 0 : i32
    return %c0_i32, %arg0 : i32, i32
  }
  func.func @transform_5(%arg0: i32) -> (i32, i32) {
    %c0_i32 = arith.constant 0 : i32
    %c0_i32_0 = arith.constant 0 : i32
    return %arg0, %c0_i32 : i32, i32
  }
}

</mosaic_0001>

<bundles_post_ra>
// kernel: tpu_custom_call.1
= control target key start
LH: loop header
LB: loop body
LE: loop exit
PB: predicated region body
PF: predicated region fallthrough
CT: control target
= control target key end

     0   :  { %11 = vsyncpa [#allocation3], 0  ;;  %s630_s0 = inlined_call_operand.hbm [shape: f32[128,128], index: 0, kind: input, shape index: {}]   ;;  %s631_s1 = inlined_call_operand.hbm [shape: f32[128,128], index: 1, kind: input, shape index: {}]   ;;  %s632_s2 = inlined_call_operand.hbm [shape: f32[2,128], index: 2, kind: input, shape index: {}]   ;;  %s633_s3 = inlined_call_operand.hbm [shape: f32[128,128], index: 3, kind: output, shape index: {0}]   ;;  %s634_s4 = inlined_call_operand.hbm [shape: f32[2,128], index: 4, kind: output, shape index: {1}]   ;;  %s635_s5 = inlined_call_operand.vmem [shape: f32[128,2], index: 5, kind: output, shape index: {2}]  }
   0x1   :  { %12 = vsyncpa [#allocation6], 0 }
   0x2   :  { %13 = vsyncpa [#allocation4], 0 }
   0x3   :  { %14 = vsyncpa [#allocation10], 0  ;;  %s32_s20 = sshll.u32 %s631_s1, 4  ;;  %s488_s21 = smov [#allocation5]   ;;  %s33_s20 = int_to_ptr.hbm [resolvable:$true] %s32_s20 }
   0x4   :  { %s34_s22 = sshll.u32 %s488_s21, 4  ;;  %s19_s25 = sshll.u32 %s630_s0, 4  ;;  %s35_s22 = int_to_ptr.vmem [resolvable:$true] %s34_s22  ;;  %s20_s25 = int_to_ptr.hbm [resolvable:$true] %s19_s25 }
   0x5   :  { %s489_s26 = smov 128   ;;  %s490_s27 = smov 8  }
   0x6   :  { %40 = dma.hbm_to_vmem [thread:$0]  %s33_s20, 2048, %s35_s22, [#allocation6], %s489_s26, %s489_s26, %s490_s27  }
   0x7   :  { %s491_s28 = smov [#allocation2]   ;;  %s46_s1 = sshll.u32 %s632_s2, 4  ;;  %s47_s1 = int_to_ptr.hbm [resolvable:$true] %s46_s1 }
   0x8   :  { %s21_s29 = sshll.u32 %s491_s28, 4  ;;  %s492_s0 = smov [#allocation7]   ;;  %s22_s29 = int_to_ptr.vmem [resolvable:$true] %s21_s29 }
   0x9   :  { %27 = dma.hbm_to_vmem [thread:$0]  %s20_s25, 2048, %s22_s29, [#allocation3], %s489_s26, %s489_s26, %s490_s27  }
   0xa   :  { %s48_s7 = sshll.u32 %s492_s0, 4  ;;  %s49_s7 = int_to_ptr.vmem [resolvable:$true] %s48_s7 }
   0xb   :  { %51 = dma.hbm_to_vmem [thread:$0]  %s47_s1, 32, %s49_s7, [#allocation6]  }
   0xc   :  { %480 = dma.done.wait [#allocation3], 2048  }
   0xd   :  { %481 = vsyncadd [#allocation3], 4294965248 }
   0xe   :  { %482 = dma.done.wait [#allocation6], 2080  }
   0xf   :  { %483 = vsyncadd [#allocation6], 4294965216  ;;  %v95_v0 = vld [vmem:[#allocation5 + $0x78] sm:$0xff]  ;;  %v94_v1 = vld [vmem:[#allocation5 + $0x70] sm:$0xff]  ;;  %s493_s2 = smov 112   ;;  %s494_s8 = smov [#allocation8]  }
  0x10   :  { %96 = vmatpush.msra.mxu0 %v95_v0  ;;  %320 = vmatpush.msra.mxu2 %v95_v0  ;;  %v93_v2 = vld [vmem:[#allocation5 + $0x68] sm:$0xff]  ;;  %v92_v3 = vld [vmem:[#allocation5 + $0x60] sm:$0xff]  ;;  %v91_v4 = vld [vmem:[#allocation5 + $0x58] sm:$0xff]  ;;  %s284_s9 = sshll.u32 %s494_s8, 4  ;;  %s286_s12 = sshll.u32 %s633_s3, 4  ;;  %vm241_vm0 = vcmask 15360   ;;  %s285_s9 = int_to_ptr.vmem [resolvable:$true] %s284_s9  ;;  %s287_s12 = int_to_ptr.hbm [resolvable:$true] %s286_s12 }
  0x11   :  { %321 = vmatpush.msra.mxu3 %v95_v0  ;;  %v90_v5 = vld [vmem:[#allocation5 + $0x50] sm:$0xff]  ;;  %v89_v6 = vld [vmem:[#allocation5 + $0x48] sm:$0xff]  ;;  %v88_v7 = vld [vmem:[#allocation5 + $0x40] sm:$0xff]  ;;  %s495_s22 = smov [#allocation9]  }
  0x12   :  { %97 = vmatpush.msra.mxu0 %v94_v1  ;;  %322 = vmatpush.msra.mxu2 %v94_v1  ;;  %v87_v8 = vld [vmem:[#allocation5 + $0x38] sm:$0xff]  ;;  %v86_v9 = vld [vmem:[#allocation5 + $0x30] sm:$0xff]  ;;  %v85_v10 = vld [vmem:[#allocation5 + $0x28] sm:$0xff]  ;;  %s298_s23 = sshll.u32 %s495_s22, 4  ;;  %s299_s23 = int_to_ptr.vmem [resolvable:$true] %s298_s23 }
  0x13   :  { %323 = vmatpush.msra.mxu3 %v94_v1  ;;  %v84_v11 = vld [vmem:[#allocation5 + $0x20] sm:$0xff]  ;;  %v83_v12 = vld [vmem:[#allocation5 + $0x18] sm:$0xff]  ;;  %v82_v13 = vld [vmem:[#allocation5 + $0x10] sm:$0xff] }
  0x14   :  { %98 = vmatpush.msra.mxu0 %v93_v2  ;;  %324 = vmatpush.msra.mxu2 %v93_v2  ;;  %v81_v14 = vld [vmem:[#allocation5 + $0x8] sm:$0xff]  ;;  %v80_v15 = vld [vmem:[#allocation5] sm:$0xff]  ;;  %v75_v18 = vld [vmem:[#allocation2 + $0x58] sm:$0xff] }
  0x15   :  { %325 = vmatpush.msra.mxu3 %v93_v2  ;;  %v64_v16 = vld [vmem:[#allocation2] sm:$0xff]  ;;  %v69_v17 = vld [vmem:[#allocation2 + $0x28] sm:$0xff]  ;;  %v70_v20 = vld [vmem:[#allocation2 + $0x30] sm:$0xff] }
  0x16   :  { %99 = vmatpush.msra.mxu0 %v92_v3  ;;  %326 = vmatpush.msra.mxu2 %v92_v3  ;;  %v65_v19 = vld [vmem:[#allocation2 + $0x8] sm:$0xff]  ;;  %v76_v21 = vld [vmem:[#allocation2 + $0x60] sm:$0xff]  ;;  %v79_v22 = vld [vmem:[#allocation2 + $0x78] sm:$0xff] }
  0x17   :  { %327 = vmatpush.msra.mxu3 %v92_v3  ;;  %259 = vmatpush.xpose.msra.mxu1 %v79_v22  ;;  %v78_v23 = vld [vmem:[#allocation2 + $0x70] sm:$0xff]  ;;  %v71_v25 = vld [vmem:[#allocation2 + $0x38] sm:$0xff]  ;;  %v77_v26 = vld [vmem:[#allocation2 + $0x68] sm:$0xff] }
  0x18   :  { %100 = vmatpush.msra.mxu0 %v91_v4  ;;  %328 = vmatpush.msra.mxu2 %v91_v4  ;;  %v66_v24 = vld [vmem:[#allocation2 + $0x10] sm:$0xff]  ;;  %v72_v27 = vld [vmem:[#allocation2 + $0x40] sm:$0xff]  ;;  %v67_v28 = vld [vmem:[#allocation2 + $0x18] sm:$0xff] }
  0x19   :  { %329 = vmatpush.msra.mxu3 %v91_v4  ;;  %v74_v29 = vld [vmem:[#allocation2 + $0x50] sm:$0xff]  ;;  %v73_v30 = vld [vmem:[#allocation2 + $0x48] sm:$0xff]  ;;  %v68_v31 = vld [vmem:[#allocation2 + $0x20] sm:$0xff] }
  0x1a   :  { %101 = vmatpush.msra.mxu0 %v90_v5  ;;  %330 = vmatpush.msra.mxu2 %v90_v5  ;;  %v258_v34 = vld [vmem:[#allocation7] sm:$0x3] }
  0x1b   :  { %331 = vmatpush.msra.mxu3 %v90_v5  ;;  %260 = vmatpush.xpose.msra.mxu1 %v78_v23 }
  0x1c   :  { %102 = vmatpush.msra.mxu0 %v89_v6  ;;  %332 = vmatpush.msra.mxu2 %v89_v6 }
  0x1d   :  { %333 = vmatpush.msra.mxu3 %v89_v6 }
  0x1e   :  { %103 = vmatpush.msra.mxu0 %v88_v7  ;;  %334 = vmatpush.msra.mxu2 %v88_v7 }
  0x1f   :  { %335 = vmatpush.msra.mxu3 %v88_v7  ;;  %261 = vmatpush.xpose.msra.mxu1 %v77_v26 }
  0x20   :  { %104 = vmatpush.msra.mxu0 %v87_v8  ;;  %336 = vmatpush.msra.mxu2 %v87_v8 }
  0x21   :  { %337 = vmatpush.msra.mxu3 %v87_v8 }
  0x22   :  { %105 = vmatpush.msra.mxu0 %v86_v9  ;;  %338 = vmatpush.msra.mxu2 %v86_v9 }
  0x23   :  { %339 = vmatpush.msra.mxu3 %v86_v9  ;;  %262 = vmatpush.xpose.msra.mxu1 %v76_v21 }
  0x24   :  { %106 = vmatpush.msra.mxu0 %v85_v10  ;;  %340 = vmatpush.msra.mxu2 %v85_v10 }
  0x25   :  { %341 = vmatpush.msra.mxu3 %v85_v10 }
  0x26   :  { %107 = vmatpush.msra.mxu0 %v84_v11  ;;  %342 = vmatpush.msra.mxu2 %v84_v11 }
  0x27   :  { %343 = vmatpush.msra.mxu3 %v84_v11  ;;  %263 = vmatpush.xpose.msra.mxu1 %v75_v18 }
  0x28   :  { %108 = vmatpush.msra.mxu0 %v83_v12  ;;  %344 = vmatpush.msra.mxu2 %v83_v12 }
  0x29   :  { %345 = vmatpush.msra.mxu3 %v83_v12 }
  0x2a   :  { %109 = vmatpush.msra.mxu0 %v82_v13  ;;  %346 = vmatpush.msra.mxu2 %v82_v13 }
  0x2b   :  { %347 = vmatpush.msra.mxu3 %v82_v13  ;;  %264 = vmatpush.xpose.msra.mxu1 %v74_v29 }
  0x2c   :  { %110 = vmatpush.msra.mxu0 %v81_v14  ;;  %348 = vmatpush.msra.mxu2 %v81_v14 }
  0x2d   :  { %349 = vmatpush.msra.mxu3 %v81_v14 }
  0x2e   :  { %111 = vmatpush.msra.mxu0 %v80_v15  ;;  %350 = vmatpush.msra.mxu2 %v80_v15 }
  0x2f   :  { %112 = vmatmul.f32.vlgmr.msra.gmra.mxu0 %v64_v16  ;;  %127 = vmatmul.f32.vlgmr.msra.gmra.mxu2 %v69_v17 }
  0x30   :  { %351 = vmatpush.msra.mxu3 %v80_v15  ;;  %265 = vmatpush.xpose.msra.mxu1 %v73_v30 }
  0x31   :  { %145 = vmatmul.f32.vlgmr.msra.gmra.mxu3 %v75_v18 }
  0x34   :  { %266 = vmatpush.xpose.msra.mxu1 %v72_v27 }
  0x37   :  { %115 = vmatmul.f32.gmra.mxu0 %v65_v19  ;;  %130 = vmatmul.f32.gmra.mxu2 %v70_v20 }
  0x38   :  { %267 = vmatpush.xpose.msra.mxu1 %v71_v25 }
  0x39   :  { %148 = vmatmul.f32.gmra.mxu3 %v76_v21 }
  0x3c   :  { %268 = vmatpush.xpose.msra.mxu1 %v70_v20 }
  0x3f   :  { %118 = vmatmul.f32.gmra.mxu0 %v66_v24  ;;  %133 = vmatmul.f32.gmra.mxu2 %v71_v25 }
  0x40   :  { %269 = vmatpush.xpose.msra.mxu1 %v69_v17 }
  0x41   :  { %151 = vmatmul.f32.gmra.mxu3 %v77_v26 }
  0x44   :  { %270 = vmatpush.xpose.msra.mxu1 %v68_v31 }
  0x47   :  { %136 = vmatmul.f32.gmra.mxu2 %v72_v27  ;;  %121 = vmatmul.f32.gmra.mxu0 %v67_v28 }
  0x48   :  { %271 = vmatpush.xpose.msra.mxu1 %v67_v28 }
  0x49   :  { %154 = vmatmul.f32.gmra.mxu3 %v78_v23 }
  0x4c   :  { %272 = vmatpush.xpose.msra.mxu1 %v66_v24 }
  0x4f   :  { %139 = vmatmul.f32.gmra.mxu2 %v73_v30  ;;  %124 = vmatmul.f32.gmra.mxu0 %v68_v31 }
  0x50   :  { %273 = vmatpush.xpose.msra.mxu1 %v65_v19 }
  0x51   :  { %157 = vmatmul.f32.gmra.mxu3 %v79_v22 }
  0x54   :  { %274 = vmatpush.xpose.msra.mxu1 %v64_v16 }
  0x57   :  { %142 = vmatmul.f32.gmra.mxu2 %v74_v29  ;;  %275 = vmatmul.f32.vlgmr.msra.gmra.mxu1 %v258_v34 }
  0xac   :  { %v113_v32 = vpop.f32.mrf.mxu0 }
  0xad   :  { %161 = vst [vmem:[#allocation8] sm:$0xff] %v113_v32  ;;  %193 = vrot.lane.b32.xlu0 %v113_v32, %s493_s2 }
  0xb2   :  { %v128_v33 = vpop.f32.mrf.mxu2 }
  0xb3   :  { %166 = vst [vmem:[#allocation8 + $0x28] sm:$0xff] %v128_v33  ;;  %203 = vrot.lane.b32.xlu2 %v128_v33, %s493_s2 }
  0xb4   :  { %v116_v35 = vpop.f32.mrf.mxu0  ;;  %v146_v36 = vpop.f32.mrf.mxu3 }
  0xb5   :  { %162 = vst [vmem:[#allocation8 + $0x8] sm:$0xff] %v116_v35  ;;  %195 = vrot.lane.b32.xlu0 %v116_v35, %s493_s2 }
  0xb6   :  { %172 = vst [vmem:[#allocation8 + $0x58] sm:$0xff] %v146_v36 }
  0xba   :  { %v131_v37 = vpop.f32.mrf.mxu2 }
  0xbb   :  { %167 = vst [vmem:[#allocation8 + $0x30] sm:$0xff] %v131_v37  ;;  %215 = vrot.lane.b32.xlu2 %v146_v36, %s493_s2 }
  0xbc   :  { %v119_v38 = vpop.f32.mrf.mxu0  ;;  %v149_v39 = vpop.f32.mrf.mxu3 }
  0xbd   :  { %163 = vst [vmem:[#allocation8 + $0x10] sm:$0xff] %v119_v38  ;;  %205 = vrot.lane.b32.xlu0 %v131_v37, %s493_s2  ;;  %197 = vrot.lane.b32.xlu1 %v119_v38, %s493_s2 }
  0xbe   :  { %173 = vst [vmem:[#allocation8 + $0x60] sm:$0xff] %v149_v39 }
  0xc2   :  { %v134_v40 = vpop.f32.mrf.mxu2 }
  0xc3   :  { %168 = vst [vmem:[#allocation8 + $0x38] sm:$0xff] %v134_v40 }
  0xc4   :  { %v122_v41 = vpop.f32.mrf.mxu0  ;;  %v152_v42 = vpop.f32.mrf.mxu3 }
  0xc5   :  { %207 = vrot.lane.b32.xlu1 %v134_v40, %s493_s2  ;;  %164 = vst [vmem:[#allocation8 + $0x18] sm:$0xff] %v122_v41  ;;  %217 = vrot.lane.b32.xlu0 %v149_v39, %s493_s2 }
  0xc6   :  { %174 = vst [vmem:[#allocation8 + $0x68] sm:$0xff] %v152_v42 }
  0xca   :  { %v137_v43 = vpop.f32.mrf.mxu2 }
  0xcb   :  { %169 = vst [vmem:[#allocation8 + $0x40] sm:$0xff] %v137_v43  ;;  %209 = vrot.lane.b32.xlu2 %v137_v43, %s493_s2 }
  0xcc   :  { %v125_v44 = vpop.f32.mrf.mxu0  ;;  %v155_v45 = vpop.f32.mrf.mxu3 }
  0xcd   :  { %165 = vst [vmem:[#allocation8 + $0x20] sm:$0xff] %v125_v44  ;;  %199 = vrot.lane.b32.xlu1 %v122_v41, %s493_s2 }
  0xce   :  { %175 = vst [vmem:[#allocation8 + $0x70] sm:$0xff] %v155_v45 }
  0xd2   :  { %v140_v46 = vpop.f32.mrf.mxu2 }
  0xd3   :  { %170 = vst [vmem:[#allocation8 + $0x48] sm:$0xff] %v140_v46  ;;  %211 = vrot.lane.b32.xlu0 %v140_v46, %s493_s2  ;;  %201 = vrot.lane.b32.xlu2 %v125_v44, %s493_s2 }
  0xd4   :  { %v158_v47 = vpop.f32.mrf.mxu3  ;;  %v276_v57 = vpop.f32.mrf.mxu1 }
  0xd5   :  { %176 = vst [vmem:[#allocation8 + $0x78] sm:$0xff] %v158_v47 }
  0xd6   :  { %279 = vst [vmem:[#allocation9] sm:$0x3] %v276_v57 }
  0xda   :  { %v143_v48 = vpop.f32.mrf.mxu2 }
  0xdb   :  { %171 = vst [vmem:[#allocation8 + $0x50] sm:$0xff] %v143_v48  ;;  %213 = vrot.lane.b32.xlu1 %v143_v48, %s493_s2  ;;  %221 = vrot.lane.b32.xlu2 %v155_v45, %s493_s2 }
  0xdc   :  { %223 = vrot.lane.b32.xlu0 %v158_v47, %s493_s2 }
  0xdd   :  { %292 = dma.vmem_to_hbm [thread:$0]  %s285_s9, 2048, %s287_s12, [#allocation4], %s489_s26, %s489_s26, %s490_s27  }
  0xde   :  { %s300_s26 = sshll.u32 %s634_s4, 4  ;;  %s301_s26 = int_to_ptr.hbm [resolvable:$true] %s300_s26 }
  0xdf   :  { %303 = dma.vmem_to_hbm [thread:$0]  %s299_s23, 32, %s301_s26, [#allocation10]  }
  0xe3   :  { %219 = vrot.lane.b32.xlu1 %v152_v42, %s493_s2 }
 0x10d   :  { %v204_v49 = vpop.permute.xlu2 %203 }
 0x10e   :  { %247 = vst.msk [vmem:[%s635_s5 + $0x28] sm:$0xff] %vm241_vm0, %v204_v49 }
 0x115   :  { %v216_v50 = vpop.permute.xlu2 %215 }
 0x116   :  { %253 = vst.msk [vmem:[%s635_s5 + $0x58] sm:$0xff] %vm241_vm0, %v216_v50 }
 0x11f   :  { %v194_v51 = vpop.permute.xlu0 %193 }
 0x120   :  { %242 = vst.msk [vmem:[%s635_s5] sm:$0xff] %vm241_vm0, %v194_v51 }
 0x125   :  { %v210_v52 = vpop.permute.xlu2 %209 }
 0x126   :  { %250 = vst.msk [vmem:[%s635_s5 + $0x40] sm:$0xff] %vm241_vm0, %v210_v52 }
 0x127   :  { %v196_v53 = vpop.permute.xlu0 %195 }
 0x128   :  { %243 = vst.msk [vmem:[%s635_s5 + $0x8] sm:$0xff] %vm241_vm0, %v196_v53 }
 0x12d   :  { %v202_v54 = vpop.permute.xlu2 %201 }
 0x12e   :  { %246 = vst.msk [vmem:[%s635_s5 + $0x20] sm:$0xff] %vm241_vm0, %v202_v54 }
 0x12f   :  { %v206_v55 = vpop.permute.xlu0 %205  ;;  %v198_v56 = vpop.permute.xlu1 %197 }
 0x130   :  { %248 = vst.msk [vmem:[%s635_s5 + $0x30] sm:$0xff] %vm241_vm0, %v206_v55 }
 0x131   :  { %244 = vst.msk [vmem:[%s635_s5 + $0x10] sm:$0xff] %vm241_vm0, %v198_v56 }
 0x135   :  { %v222_v58 = vpop.permute.xlu2 %221 }
 0x136   :  { %256 = vst.msk [vmem:[%s635_s5 + $0x70] sm:$0xff] %vm241_vm0, %v222_v58 }
 0x137   :  { %v208_v59 = vpop.permute.xlu1 %207  ;;  %v218_v60 = vpop.permute.xlu0 %217 }
 0x138   :  { %249 = vst.msk [vmem:[%s635_s5 + $0x38] sm:$0xff] %vm241_vm0, %v208_v59 }
 0x139   :  { %254 = vst.msk [vmem:[%s635_s5 + $0x60] sm:$0xff] %vm241_vm0, %v218_v60 }
 0x13f   :  { %v200_v61 = vpop.permute.xlu1 %199 }
 0x140   :  { %245 = vst.msk [vmem:[%s635_s5 + $0x18] sm:$0xff] %vm241_vm0, %v200_v61 }
 0x145   :  { %v212_v62 = vpop.permute.xlu0 %211 }
 0x146   :  { %251 = vst.msk [vmem:[%s635_s5 + $0x48] sm:$0xff] %vm241_vm0, %v212_v62 }
 0x14d   :  { %v214_v63 = vpop.permute.xlu1 %213 }
 0x14e   :  { %252 = vst.msk [vmem:[%s635_s5 + $0x50] sm:$0xff] %vm241_vm0, %v214_v63  ;;  %v224_v0 = vpop.permute.xlu0 %223 }
 0x14f   :  { %257 = vst.msk [vmem:[%s635_s5 + $0x78] sm:$0xff] %vm241_vm0, %v224_v0 }
 0x155   :  { %v220_v1 = vpop.permute.xlu1 %219 }
 0x156   :  { %255 = vst.msk [vmem:[%s635_s5 + $0x68] sm:$0xff] %vm241_vm0, %v220_v1 }
 0x157   :  { %484 = dma.done.wait [#allocation4], 2048  }
 0x158   :  { %485 = vsyncadd [#allocation4], 4294965248 }
 0x159   :  { %486 = dma.done.wait [#allocation10], 32  }
 0x15a   :  { %487 = vsyncadd [#allocation10], 4294967264 }
 0x15b   :  { %316 = vsyncpa [#allocation3], 1 }
 0x15c   :  { %317 = vsyncpa [#allocation6], 1 }
 0x15d   :  { %318 = vsyncpa [#allocation4], 1 }
 0x15e   :  { %319 = vsyncpa [#allocation10], 1 }

</bundles_post_ra>
